<compile_context>
chip_gen: v7x
topology: tpu7x:2x2x1
jax: 0.10.0
libtpu: 0.0.40
codegen_flags: <defaults>
</compile_context>

<pallas_src>
import functools

import numpy as np

import jax
import jax.numpy as jnp
from jax import lax
from jax.experimental import pallas as pl
from jax.experimental.pallas import tpu as pltpu


def _fused_block_kernel(x_ref, w1_ref, b1_ref, w2_ref, b2_ref, mask_ref,
                        out_ref, patch_ref, *, W):
    """Fused ResNet-18 basic block (stride 1, identity shortcut), one image.

    x_ref:     (C, H*W)   input activations (flattened NCHW; lanes = H*W)
    w1_ref:    (C, 9*C)   conv1 weight, col index = (dy*3 + dx)*C + c_in
    b1_ref:    (C, 1)     conv1 bias (broadcast along lanes)
    w2_ref:    (C, 9*C)   conv2 weight
    b2_ref:    (C, 1)     conv2 bias
    mask_ref:  (9, H*W)   0/1 zero-padding validity mask per 3x3 tap
    out_ref:   (C, H*W)   output activations
    patch_ref: (9*C, H*W) VMEM scratch: im2col patch matrix (reused by both convs)
    """
    C, HW = x_ref.shape
    x = x_ref[...].astype(jnp.float32)                # (C, HW)

    def im2col(v):
        # patch[tap*C + c, p] = v_zero_padded[c, pixel p shifted by tap (dy,dx)]
        # implemented as a lane rotation + mask (no slice/reshape relayouts).
        for dy in range(3):
            for dx in range(3):
                tap = dy * 3 + dx
                off = (dy - 1) * W + (dx - 1)         # flat spatial offset
                if off == 0:
                    # centre tap: no shift, mask is all ones.
                    patch_ref[pl.ds(tap * C, C), :] = v
                    continue
                # want shifted[:, p] == v[:, p + off]  ==  jnp.roll(v, -off)
                shifted = pltpu.roll(v, (-off) % HW, axis=1)
                m = mask_ref[pl.ds(tap, 1), :]        # (1, HW) 0/1 mask
                patch_ref[pl.ds(tap * C, C), :] = shifted * m

    # ---- conv1 + bias + ReLU : one K = 9*C matmul on the MXU ----
    im2col(x)
    h1 = jnp.dot(w1_ref[...], patch_ref[...],
                 preferred_element_type=jnp.float32)  # (C, HW)
    h1 = jnp.maximum(h1 + b1_ref[...], 0.0)

    # ---- conv2 + bias + residual + ReLU ----
    im2col(h1)
    h2 = jnp.dot(w2_ref[...], patch_ref[...],
                 preferred_element_type=jnp.float32)
    out_ref[...] = jnp.maximum(h2 + b2_ref[...] + x, 0.0).astype(out_ref.dtype)


def _tap_masks(H, W):
    """(9, H*W) float32 0/1 masks: validity of each 3x3 tap under zero padding."""
    yy, xx = np.meshgrid(np.arange(H), np.arange(W), indexing="ij")
    rows = []
    for dy in range(3):
        for dx in range(3):
            valid = ((yy + dy - 1 >= 0) & (yy + dy - 1 < H) &
                     (xx + dx - 1 >= 0) & (xx + dx - 1 < W))
            rows.append(valid.reshape(H * W))
    return jnp.asarray(np.stack(rows), dtype=jnp.float32)


def basic_block_resnet18_1_forward(x_nchw, params):
    """Forward pass matching the PyTorch module (input/output in NCHW)."""
    w1, b1, w2, b2 = params["w1"], params["b1"], params["w2"], params["b2"]
    N, C, H, W = x_nchw.shape
    HW = H * W

    # NCHW -> (N, C, H*W): metadata-only reshape, no transpose, no copy.
    x_flat = x_nchw.reshape(N, C, HW)
    # PyTorch conv weight (Cout, Cin, 3, 3) -> (Cout, 9*Cin); column index
    # (dy*3 + dx)*Cin + cin matches the im2col patch layout.  Done once.
    w1f = jnp.transpose(w1, (0, 2, 3, 1)).reshape(C, 9 * C)
    w2f = jnp.transpose(w2, (0, 2, 3, 1)).reshape(C, 9 * C)
    b1c = b1.reshape(C, 1)
    b2c = b2.reshape(C, 1)
    masks = _tap_masks(H, W)                          # (9, HW) constant

    kernel = functools.partial(_fused_block_kernel, W=W)

    out_flat = pl.pallas_call(
        kernel,
        out_shape=jax.ShapeDtypeStruct((N, C, HW), x_nchw.dtype),
        grid=(N,),
        in_specs=[
            pl.BlockSpec((None, C, HW), lambda n: (n, 0, 0)),   # x (per image)
            pl.BlockSpec((C, 9 * C), lambda n: (0, 0)),         # w1
            pl.BlockSpec((C, 1), lambda n: (0, 0)),             # b1
            pl.BlockSpec((C, 9 * C), lambda n: (0, 0)),         # w2
            pl.BlockSpec((C, 1), lambda n: (0, 0)),             # b2
            pl.BlockSpec((9, HW), lambda n: (0, 0)),            # tap masks
        ],
        out_specs=pl.BlockSpec((None, C, HW), lambda n: (n, 0, 0)),
        scratch_shapes=[pltpu.VMEM((9 * C, HW), jnp.float32)],
        compiler_params=pltpu.CompilerParams(
            dimension_semantics=("parallel",)),
        # TODO(synk): for real ResNet shapes (C=64, H=W=56, big N) add an
        # H-tiling grid axis and re-derive VMEM usage against v7x's 64 MiB.
    )(x_flat, w1f, b1c, w2f, b2c, masks)

    return out_flat.reshape(N, C, H, W)


def _reference_forward(x, params):
    """Pure-JAX reference (lax.conv) for a correctness sanity check."""
    def conv(h, w, b):
        y = lax.conv_general_dilated(
            h, w, window_strides=(1, 1), padding=((1, 1), (1, 1)),
            dimension_numbers=("NCHW", "OIHW", "NCHW"),
            precision=lax.Precision.HIGHEST)
        return y + b[None, :, None, None]
    h = jnp.maximum(conv(x, params["w1"], params["b1"]), 0.0)
    h = conv(h, params["w2"], params["b2"])
    return jnp.maximum(h + x, 0.0)


if __name__ == "__main__":
    key = jax.random.PRNGKey(0)
    N, C, H, W = 2, 4, 16, 16
    kx, k1, kb1, k2, kb2 = jax.random.split(key, 5)

    x = jax.random.normal(kx, (N, C, H, W), dtype=jnp.float32)
    params = {
        "w1": jax.random.normal(k1, (C, C, 3, 3), dtype=jnp.float32) * 0.1,
        "b1": jax.random.normal(kb1, (C,), dtype=jnp.float32) * 0.1,
        "w2": jax.random.normal(k2, (C, C, 3, 3), dtype=jnp.float32) * 0.1,
        "b2": jax.random.normal(kb2, (C,), dtype=jnp.float32) * 0.1,
    }

    fwd = jax.jit(basic_block_resnet18_1_forward)
    out = jax.block_until_ready(fwd(x, params))

    ref = _reference_forward(x, params)
    assert out.shape == (N, C, H, W)
    max_err = float(jnp.max(jnp.abs(out - ref)))
    assert jnp.allclose(out, ref, atol=1e-2, rtol=1e-2), max_err

    print("KERNEL_OK")
</pallas_src>

<mosaic_0001>
module attributes {stable_mosaic.version = 11 : i64} {
  func.func @_fused_block_kernel(%arg0: i32, %arg1: memref<1x4x256xf32, #tpu.memory_space<vmem>>, %arg2: memref<4x36xf32, #tpu.memory_space<vmem>>, %arg3: memref<4x1xf32, #tpu.memory_space<vmem>>, %arg4: memref<4x36xf32, #tpu.memory_space<vmem>>, %arg5: memref<4x1xf32, #tpu.memory_space<vmem>>, %arg6: memref<9x256xf32, #tpu.memory_space<vmem>>, %arg7: memref<1x4x256xf32, #tpu.memory_space<vmem>>, %arg8: memref<36x256xf32, #tpu.memory_space<vmem>>) attributes {dimension_semantics = [#tpu.dimension_semantics<parallel>], iteration_bounds = array<i64: 2>, scalar_prefetch = 0 : i64, scratch_operands = 1 : i64, tpu.core_type = #tpu.core_type<tc>, window_params = [{transform_indices = @transform_0, window_bounds = array<i64: 1, 4, 256>}, {pipeline_mode = #tpu.pipeline_mode<synchronous>, transform_indices = @transform_1, window_bounds = array<i64: 4, 36>}, {pipeline_mode = #tpu.pipeline_mode<synchronous>, transform_indices = @transform_2, window_bounds = array<i64: 4, 1>}, {pipeline_mode = #tpu.pipeline_mode<synchronous>, transform_indices = @transform_3, window_bounds = array<i64: 4, 36>}, {pipeline_mode = #tpu.pipeline_mode<synchronous>, transform_indices = @transform_4, window_bounds = array<i64: 4, 1>}, {pipeline_mode = #tpu.pipeline_mode<synchronous>, transform_indices = @transform_5, window_bounds = array<i64: 9, 256>}, {transform_indices = @transform_6, window_bounds = array<i64: 1, 4, 256>}]} {
    %c0 = arith.constant 0 : index
    %c0_0 = arith.constant 0 : index
    %c0_1 = arith.constant 0 : index
    %0 = vector.load %arg1[%c0, %c0_0, %c0_1] : memref<1x4x256xf32, #tpu.memory_space<vmem>>, vector<1x4x256xf32>
    %1 = vector.shape_cast %0 : vector<1x4x256xf32> to vector<4x256xf32>
    %c17_i32 = arith.constant 17 : i32
    %2 = tpu.dynamic_rotate %1 by %c17_i32 dim 1 : vector<4x256xf32>, i32 -> vector<4x256xf32>
    %c0_2 = arith.constant 0 : index
    %c0_3 = arith.constant 0 : index
    %3 = vector.load %arg6[%c0_2, %c0_3] : memref<9x256xf32, #tpu.memory_space<vmem>>, vector<1x256xf32>
    %4 = vector.broadcast %3 : vector<1x256xf32> to vector<4x256xf32>
    %5 = arith.mulf %2, %4 : vector<4x256xf32>
    %c0_4 = arith.constant 0 : index
    %c0_5 = arith.constant 0 : index
    %6 = vector.load %arg8[%c0_4, %c0_5] : memref<36x256xf32, #tpu.memory_space<vmem>>, vector<4x256xf32>
    tpu.vector_store %arg8[%c0_4, %c0_5], %5 {strides = array<i32>} : memref<36x256xf32, #tpu.memory_space<vmem>>, vector<4x256xf32>,
    %c16_i32 = arith.constant 16 : i32
    %7 = tpu.dynamic_rotate %1 by %c16_i32 dim 1 : vector<4x256xf32>, i32 -> vector<4x256xf32>
    %c1 = arith.constant 1 : index
    %c0_6 = arith.constant 0 : index
    %8 = vector.load %arg6[%c1, %c0_6] : memref<9x256xf32, #tpu.memory_space<vmem>>, vector<1x256xf32>
    %9 = vector.broadcast %8 : vector<1x256xf32> to vector<4x256xf32>
    %10 = arith.mulf %7, %9 : vector<4x256xf32>
    %c4 = arith.constant 4 : index
    %c0_7 = arith.constant 0 : index
    %11 = vector.load %arg8[%c4, %c0_7] : memref<36x256xf32, #tpu.memory_space<vmem>>, vector<4x256xf32>
    tpu.vector_store %arg8[%c4, %c0_7], %10 {strides = array<i32>} : memref<36x256xf32, #tpu.memory_space<vmem>>, vector<4x256xf32>,
    %c15_i32 = arith.constant 15 : i32
    %12 = tpu.dynamic_rotate %1 by %c15_i32 dim 1 : vector<4x256xf32>, i32 -> vector<4x256xf32>
    %c2 = arith.constant 2 : index
    %c0_8 = arith.constant 0 : index
    %13 = vector.load %arg6[%c2, %c0_8] : memref<9x256xf32, #tpu.memory_space<vmem>>, vector<1x256xf32>
    %14 = vector.broadcast %13 : vector<1x256xf32> to vector<4x256xf32>
    %15 = arith.mulf %12, %14 : vector<4x256xf32>
    %c8 = arith.constant 8 : index
    %c0_9 = arith.constant 0 : index
    %16 = vector.load %arg8[%c8, %c0_9] : memref<36x256xf32, #tpu.memory_space<vmem>>, vector<4x256xf32>
    tpu.vector_store %arg8[%c8, %c0_9], %15 {strides = array<i32>} : memref<36x256xf32, #tpu.memory_space<vmem>>, vector<4x256xf32>,
    %c1_i32 = arith.constant 1 : i32
    %17 = tpu.dynamic_rotate %1 by %c1_i32 dim 1 : vector<4x256xf32>, i32 -> vector<4x256xf32>
    %c3 = arith.constant 3 : index
    %c0_10 = arith.constant 0 : index
    %18 = vector.load %arg6[%c3, %c0_10] : memref<9x256xf32, #tpu.memory_space<vmem>>, vector<1x256xf32>
    %19 = vector.broadcast %18 : vector<1x256xf32> to vector<4x256xf32>
    %20 = arith.mulf %17, %19 : vector<4x256xf32>
    %c12 = arith.constant 12 : index
    %c0_11 = arith.constant 0 : index
    %21 = vector.load %arg8[%c12, %c0_11] : memref<36x256xf32, #tpu.memory_space<vmem>>, vector<4x256xf32>
    tpu.vector_store %arg8[%c12, %c0_11], %20 {strides = array<i32>} : memref<36x256xf32, #tpu.memory_space<vmem>>, vector<4x256xf32>,
    %c16 = arith.constant 16 : index
    %c0_12 = arith.constant 0 : index
    %22 = vector.load %arg8[%c16, %c0_12] : memref<36x256xf32, #tpu.memory_space<vmem>>, vector<4x256xf32>
    tpu.vector_store %arg8[%c16, %c0_12], %1 {strides = array<i32>} : memref<36x256xf32, #tpu.memory_space<vmem>>, vector<4x256xf32>,
    %c255_i32 = arith.constant 255 : i32
    %23 = tpu.dynamic_rotate %1 by %c255_i32 dim 1 : vector<4x256xf32>, i32 -> vector<4x256xf32>
    %c5 = arith.constant 5 : index
    %c0_13 = arith.constant 0 : index
    %24 = vector.load %arg6[%c5, %c0_13] : memref<9x256xf32, #tpu.memory_space<vmem>>, vector<1x256xf32>
    %25 = vector.broadcast %24 : vector<1x256xf32> to vector<4x256xf32>
    %26 = arith.mulf %23, %25 : vector<4x256xf32>
    %c20 = arith.constant 20 : index
    %c0_14 = arith.constant 0 : index
    %27 = vector.load %arg8[%c20, %c0_14] : memref<36x256xf32, #tpu.memory_space<vmem>>, vector<4x256xf32>
    tpu.vector_store %arg8[%c20, %c0_14], %26 {strides = array<i32>} : memref<36x256xf32, #tpu.memory_space<vmem>>, vector<4x256xf32>,
    %c241_i32 = arith.constant 241 : i32
    %28 = tpu.dynamic_rotate %1 by %c241_i32 dim 1 : vector<4x256xf32>, i32 -> vector<4x256xf32>
    %c6 = arith.constant 6 : index
    %c0_15 = arith.constant 0 : index
    %29 = vector.load %arg6[%c6, %c0_15] : memref<9x256xf32, #tpu.memory_space<vmem>>, vector<1x256xf32>
    %30 = vector.broadcast %29 : vector<1x256xf32> to vector<4x256xf32>
    %31 = arith.mulf %28, %30 : vector<4x256xf32>
    %c24 = arith.constant 24 : index
    %c0_16 = arith.constant 0 : index
    %32 = vector.load %arg8[%c24, %c0_16] : memref<36x256xf32, #tpu.memory_space<vmem>>, vector<4x256xf32>
    tpu.vector_store %arg8[%c24, %c0_16], %31 {strides = array<i32>} : memref<36x256xf32, #tpu.memory_space<vmem>>, vector<4x256xf32>,
    %c240_i32 = arith.constant 240 : i32
    %33 = tpu.dynamic_rotate %1 by %c240_i32 dim 1 : vector<4x256xf32>, i32 -> vector<4x256xf32>
    %c7 = arith.constant 7 : index
    %c0_17 = arith.constant 0 : index
    %34 = vector.load %arg6[%c7, %c0_17] : memref<9x256xf32, #tpu.memory_space<vmem>>, vector<1x256xf32>
    %35 = vector.broadcast %34 : vector<1x256xf32> to vector<4x256xf32>
    %36 = arith.mulf %33, %35 : vector<4x256xf32>
    %c28 = arith.constant 28 : index
    %c0_18 = arith.constant 0 : index
    %37 = vector.load %arg8[%c28, %c0_18] : memref<36x256xf32, #tpu.memory_space<vmem>>, vector<4x256xf32>
    tpu.vector_store %arg8[%c28, %c0_18], %36 {strides = array<i32>} : memref<36x256xf32, #tpu.memory_space<vmem>>, vector<4x256xf32>,
    %c239_i32 = arith.constant 239 : i32
    %38 = tpu.dynamic_rotate %1 by %c239_i32 dim 1 : vector<4x256xf32>, i32 -> vector<4x256xf32>
    %c8_19 = arith.constant 8 : index
    %c0_20 = arith.constant 0 : index
    %39 = vector.load %arg6[%c8_19, %c0_20] : memref<9x256xf32, #tpu.memory_space<vmem>>, vector<1x256xf32>
    %40 = vector.broadcast %39 : vector<1x256xf32> to vector<4x256xf32>
    %41 = arith.mulf %38, %40 : vector<4x256xf32>
    %c32 = arith.constant 32 : index
    %c0_21 = arith.constant 0 : index
    %42 = vector.load %arg8[%c32, %c0_21] : memref<36x256xf32, #tpu.memory_space<vmem>>, vector<4x256xf32>
    tpu.vector_store %arg8[%c32, %c0_21], %41 {strides = array<i32>} : memref<36x256xf32, #tpu.memory_space<vmem>>, vector<4x256xf32>,
    %c0_22 = arith.constant 0 : index
    %c0_23 = arith.constant 0 : index
    %43 = vector.load %arg2[%c0_22, %c0_23] : memref<4x36xf32, #tpu.memory_space<vmem>>, vector<4x36xf32>
    %c0_24 = arith.constant 0 : index
    %c0_25 = arith.constant 0 : index
    %44 = vector.load %arg8[%c0_24, %c0_25] : memref<36x256xf32, #tpu.memory_space<vmem>>, vector<36x256xf32>
    %cst = arith.constant dense<0.000000e+00> : vector<4x256xf32>
    %45 = tpu.matmul %43, %44, %cst {dimension_numbers = #tpu.dot_dimension_numbers<[1], [0], [0], [1], [0, 0, 1, 1], [], []>} : vector<4x36xf32>, vector<36x256xf32>, vector<4x256xf32> -> vector<4x256xf32>
    %c0_26 = arith.constant 0 : index
    %c0_27 = arith.constant 0 : index
    %46 = vector.load %arg3[%c0_26, %c0_27] : memref<4x1xf32, #tpu.memory_space<vmem>>, vector<4x1xf32>
    %47 = vector.broadcast %46 : vector<4x1xf32> to vector<4x256xf32>
    %48 = arith.addf %45, %47 : vector<4x256xf32>
    %cst_28 = arith.constant 0.000000e+00 : f32
    %49 = vector.broadcast %cst_28 : f32 to vector<4x256xf32>
    %50 = arith.maximumf %48, %49 : vector<4x256xf32>
    %c17_i32_29 = arith.constant 17 : i32
    %51 = tpu.dynamic_rotate %50 by %c17_i32_29 dim 1 : vector<4x256xf32>, i32 -> vector<4x256xf32>
    %c0_30 = arith.constant 0 : index
    %c0_31 = arith.constant 0 : index
    %52 = vector.load %arg6[%c0_30, %c0_31] : memref<9x256xf32, #tpu.memory_space<vmem>>, vector<1x256xf32>
    %53 = vector.broadcast %52 : vector<1x256xf32> to vector<4x256xf32>
    %54 = arith.mulf %51, %53 : vector<4x256xf32>
    %c0_32 = arith.constant 0 : index
    %c0_33 = arith.constant 0 : index
    %55 = vector.load %arg8[%c0_32, %c0_33] : memref<36x256xf32, #tpu.memory_space<vmem>>, vector<4x256xf32>
    tpu.vector_store %arg8[%c0_32, %c0_33], %54 {strides = array<i32>} : memref<36x256xf32, #tpu.memory_space<vmem>>, vector<4x256xf32>,
    %c16_i32_34 = arith.constant 16 : i32
    %56 = tpu.dynamic_rotate %50 by %c16_i32_34 dim 1 : vector<4x256xf32>, i32 -> vector<4x256xf32>
    %c1_35 = arith.constant 1 : index
    %c0_36 = arith.constant 0 : index
    %57 = vector.load %arg6[%c1_35, %c0_36] : memref<9x256xf32, #tpu.memory_space<vmem>>, vector<1x256xf32>
    %58 = vector.broadcast %57 : vector<1x256xf32> to vector<4x256xf32>
    %59 = arith.mulf %56, %58 : vector<4x256xf32>
    %c4_37 = arith.constant 4 : index
    %c0_38 = arith.constant 0 : index
    %60 = vector.load %arg8[%c4_37, %c0_38] : memref<36x256xf32, #tpu.memory_space<vmem>>, vector<4x256xf32>
    tpu.vector_store %arg8[%c4_37, %c0_38], %59 {strides = array<i32>} : memref<36x256xf32, #tpu.memory_space<vmem>>, vector<4x256xf32>,
    %c15_i32_39 = arith.constant 15 : i32
    %61 = tpu.dynamic_rotate %50 by %c15_i32_39 dim 1 : vector<4x256xf32>, i32 -> vector<4x256xf32>
    %c2_40 = arith.constant 2 : index
    %c0_41 = arith.constant 0 : index
    %62 = vector.load %arg6[%c2_40, %c0_41] : memref<9x256xf32, #tpu.memory_space<vmem>>, vector<1x256xf32>
    %63 = vector.broadcast %62 : vector<1x256xf32> to vector<4x256xf32>
    %64 = arith.mulf %61, %63 : vector<4x256xf32>
    %c8_42 = arith.constant 8 : index
    %c0_43 = arith.constant 0 : index
    %65 = vector.load %arg8[%c8_42, %c0_43] : memref<36x256xf32, #tpu.memory_space<vmem>>, vector<4x256xf32>
    tpu.vector_store %arg8[%c8_42, %c0_43], %64 {strides = array<i32>} : memref<36x256xf32, #tpu.memory_space<vmem>>, vector<4x256xf32>,
    %c1_i32_44 = arith.constant 1 : i32
    %66 = tpu.dynamic_rotate %50 by %c1_i32_44 dim 1 : vector<4x256xf32>, i32 -> vector<4x256xf32>
    %c3_45 = arith.constant 3 : index
    %c0_46 = arith.constant 0 : index
    %67 = vector.load %arg6[%c3_45, %c0_46] : memref<9x256xf32, #tpu.memory_space<vmem>>, vector<1x256xf32>
    %68 = vector.broadcast %67 : vector<1x256xf32> to vector<4x256xf32>
    %69 = arith.mulf %66, %68 : vector<4x256xf32>
    %c12_47 = arith.constant 12 : index
    %c0_48 = arith.constant 0 : index
    %70 = vector.load %arg8[%c12_47, %c0_48] : memref<36x256xf32, #tpu.memory_space<vmem>>, vector<4x256xf32>
    tpu.vector_store %arg8[%c12_47, %c0_48], %69 {strides = array<i32>} : memref<36x256xf32, #tpu.memory_space<vmem>>, vector<4x256xf32>,
    %c16_49 = arith.constant 16 : index
    %c0_50 = arith.constant 0 : index
    %71 = vector.load %arg8[%c16_49, %c0_50] : memref<36x256xf32, #tpu.memory_space<vmem>>, vector<4x256xf32>
    tpu.vector_store %arg8[%c16_49, %c0_50], %50 {strides = array<i32>} : memref<36x256xf32, #tpu.memory_space<vmem>>, vector<4x256xf32>,
    %c255_i32_51 = arith.constant 255 : i32
    %72 = tpu.dynamic_rotate %50 by %c255_i32_51 dim 1 : vector<4x256xf32>, i32 -> vector<4x256xf32>
    %c5_52 = arith.constant 5 : index
    %c0_53 = arith.constant 0 : index
    %73 = vector.load %arg6[%c5_52, %c0_53] : memref<9x256xf32, #tpu.memory_space<vmem>>, vector<1x256xf32>
    %74 = vector.broadcast %73 : vector<1x256xf32> to vector<4x256xf32>
    %75 = arith.mulf %72, %74 : vector<4x256xf32>
    %c20_54 = arith.constant 20 : index
    %c0_55 = arith.constant 0 : index
    %76 = vector.load %arg8[%c20_54, %c0_55] : memref<36x256xf32, #tpu.memory_space<vmem>>, vector<4x256xf32>
    tpu.vector_store %arg8[%c20_54, %c0_55], %75 {strides = array<i32>} : memref<36x256xf32, #tpu.memory_space<vmem>>, vector<4x256xf32>,
    %c241_i32_56 = arith.constant 241 : i32
    %77 = tpu.dynamic_rotate %50 by %c241_i32_56 dim 1 : vector<4x256xf32>, i32 -> vector<4x256xf32>
    %c6_57 = arith.constant 6 : index
    %c0_58 = arith.constant 0 : index
    %78 = vector.load %arg6[%c6_57, %c0_58] : memref<9x256xf32, #tpu.memory_space<vmem>>, vector<1x256xf32>
    %79 = vector.broadcast %78 : vector<1x256xf32> to vector<4x256xf32>
    %80 = arith.mulf %77, %79 : vector<4x256xf32>
    %c24_59 = arith.constant 24 : index
    %c0_60 = arith.constant 0 : index
    %81 = vector.load %arg8[%c24_59, %c0_60] : memref<36x256xf32, #tpu.memory_space<vmem>>, vector<4x256xf32>
    tpu.vector_store %arg8[%c24_59, %c0_60], %80 {strides = array<i32>} : memref<36x256xf32, #tpu.memory_space<vmem>>, vector<4x256xf32>,
    %c240_i32_61 = arith.constant 240 : i32
    %82 = tpu.dynamic_rotate %50 by %c240_i32_61 dim 1 : vector<4x256xf32>, i32 -> vector<4x256xf32>
    %c7_62 = arith.constant 7 : index
    %c0_63 = arith.constant 0 : index
    %83 = vector.load %arg6[%c7_62, %c0_63] : memref<9x256xf32, #tpu.memory_space<vmem>>, vector<1x256xf32>
    %84 = vector.broadcast %83 : vector<1x256xf32> to vector<4x256xf32>
    %85 = arith.mulf %82, %84 : vector<4x256xf32>
    %c28_64 = arith.constant 28 : index
    %c0_65 = arith.constant 0 : index
    %86 = vector.load %arg8[%c28_64, %c0_65] : memref<36x256xf32, #tpu.memory_space<vmem>>, vector<4x256xf32>
    tpu.vector_store %arg8[%c28_64, %c0_65], %85 {strides = array<i32>} : memref<36x256xf32, #tpu.memory_space<vmem>>, vector<4x256xf32>,
    %c239_i32_66 = arith.constant 239 : i32
    %87 = tpu.dynamic_rotate %50 by %c239_i32_66 dim 1 : vector<4x256xf32>, i32 -> vector<4x256xf32>
    %c8_67 = arith.constant 8 : index
    %c0_68 = arith.constant 0 : index
    %88 = vector.load %arg6[%c8_67, %c0_68] : memref<9x256xf32, #tpu.memory_space<vmem>>, vector<1x256xf32>
    %89 = vector.broadcast %88 : vector<1x256xf32> to vector<4x256xf32>
    %90 = arith.mulf %87, %89 : vector<4x256xf32>
    %c32_69 = arith.constant 32 : index
    %c0_70 = arith.constant 0 : index
    %91 = vector.load %arg8[%c32_69, %c0_70] : memref<36x256xf32, #tpu.memory_space<vmem>>, vector<4x256xf32>
    tpu.vector_store %arg8[%c32_69, %c0_70], %90 {strides = array<i32>} : memref<36x256xf32, #tpu.memory_space<vmem>>, vector<4x256xf32>,
    %c0_71 = arith.constant 0 : index
    %c0_72 = arith.constant 0 : index
    %92 = vector.load %arg4[%c0_71, %c0_72] : memref<4x36xf32, #tpu.memory_space<vmem>>, vector<4x36xf32>
    %c0_73 = arith.constant 0 : index
    %c0_74 = arith.constant 0 : index
    %93 = vector.load %arg8[%c0_73, %c0_74] : memref<36x256xf32, #tpu.memory_space<vmem>>, vector<36x256xf32>
    %cst_75 = arith.constant dense<0.000000e+00> : vector<4x256xf32>
    %94 = tpu.matmul %92, %93, %cst_75 {dimension_numbers = #tpu.dot_dimension_numbers<[1], [0], [0], [1], [0, 0, 1, 1], [], []>} : vector<4x36xf32>, vector<36x256xf32>, vector<4x256xf32> -> vector<4x256xf32>
    %c0_76 = arith.constant 0 : index
    %c0_77 = arith.constant 0 : index
    %95 = vector.load %arg5[%c0_76, %c0_77] : memref<4x1xf32, #tpu.memory_space<vmem>>, vector<4x1xf32>
    %96 = vector.broadcast %95 : vector<4x1xf32> to vector<4x256xf32>
    %97 = arith.addf %94, %96 : vector<4x256xf32>
    %98 = arith.addf %97, %1 : vector<4x256xf32>
    %cst_78 = arith.constant 0.000000e+00 : f32
    %99 = vector.broadcast %cst_78 : f32 to vector<4x256xf32>
    %100 = arith.maximumf %98, %99 : vector<4x256xf32>
    %c0_79 = arith.constant 0 : index
    %c0_80 = arith.constant 0 : index
    %c0_81 = arith.constant 0 : index
    %101 = vector.load %arg7[%c0_79, %c0_80, %c0_81] : memref<1x4x256xf32, #tpu.memory_space<vmem>>, vector<1x4x256xf32>
    %102 = vector.shape_cast %101 : vector<1x4x256xf32> to vector<4x256xf32>
    %103 = vector.shape_cast %100 : vector<4x256xf32> to vector<1x4x256xf32>
    tpu.vector_store %arg7[%c0_79, %c0_80, %c0_81], %103 {strides = array<i32>} : memref<1x4x256xf32, #tpu.memory_space<vmem>>, vector<1x4x256xf32>,
    return
  }
  func.func @transform_0(%arg0: i32) -> (i32, i32, i32) {
    %c0_i32 = arith.constant 0 : i32
    %c0_i32_0 = arith.constant 0 : i32
    %c0_i32_1 = arith.constant 0 : i32
    return %arg0, %c0_i32, %c0_i32_0 : i32, i32, i32
  }
  func.func @transform_1(%arg0: i32) -> (i32, i32) {
    %c0_i32 = arith.constant 0 : i32
    %c0_i32_0 = arith.constant 0 : i32
    %c0_i32_1 = arith.constant 0 : i32
    return %c0_i32, %c0_i32_0 : i32, i32
  }
  func.func @transform_2(%arg0: i32) -> (i32, i32) {
    %c0_i32 = arith.constant 0 : i32
    %c0_i32_0 = arith.constant 0 : i32
    %c0_i32_1 = arith.constant 0 : i32
    return %c0_i32, %c0_i32_0 : i32, i32
  }
  func.func @transform_3(%arg0: i32) -> (i32, i32) {
    %c0_i32 = arith.constant 0 : i32
    %c0_i32_0 = arith.constant 0 : i32
    %c0_i32_1 = arith.constant 0 : i32
    return %c0_i32, %c0_i32_0 : i32, i32
  }
  func.func @transform_4(%arg0: i32) -> (i32, i32) {
    %c0_i32 = arith.constant 0 : i32
    %c0_i32_0 = arith.constant 0 : i32
    %c0_i32_1 = arith.constant 0 : i32
    return %c0_i32, %c0_i32_0 : i32, i32
  }
  func.func @transform_5(%arg0: i32) -> (i32, i32) {
    %c0_i32 = arith.constant 0 : i32
    %c0_i32_0 = arith.constant 0 : i32
    %c0_i32_1 = arith.constant 0 : i32
    return %c0_i32, %c0_i32_0 : i32, i32
  }
  func.func @transform_6(%arg0: i32) -> (i32, i32, i32) {
    %c0_i32 = arith.constant 0 : i32
    %c0_i32_0 = arith.constant 0 : i32
    %c0_i32_1 = arith.constant 0 : i32
    return %arg0, %c0_i32, %c0_i32_0 : i32, i32, i32
  }
}

</mosaic_0001>

<bundles_post_ra>
// kernel: basic_block_resnet18_1_forward.1
= control target key start
LH: loop header
LB: loop body
LE: loop exit
PB: predicated region body
PF: predicated region fallthrough
CT: control target
= control target key end

     0   :  { %s1061_s21 = smov 0   ;;  %s1319_s0 = inlined_call_operand.vmem [shape: f32[2,4,256], index: 0, kind: input, shape index: {}]   ;;  %s1320_s1 = inlined_call_operand.vmem [shape: f32[4,36], index: 1, kind: input, shape index: {}]   ;;  %s1321_s2 = inlined_call_operand.vmem [shape: f32[4,1], index: 2, kind: input, shape index: {}]   ;;  %s1322_s3 = inlined_call_operand.vmem [shape: f32[4,36], index: 3, kind: input, shape index: {}]   ;;  %s1323_s4 = inlined_call_operand.vmem [shape: f32[4,1], index: 4, kind: input, shape index: {}]   ;;  %s1324_s5 = inlined_call_operand.vmem [shape: f32[9,256], index: 5, kind: input, shape index: {}]   ;;  %s1325_s6 = inlined_call_operand.vmem [shape: f32[2,4,256], index: 6, kind: output, shape index: {}]  }
   0x1 LB: > { %s939_s22 = sadd.s32 4294967295, %s1014_s21   ;;  %p943_p0 = scmp.ge.s32.totalorder %s1014_s21, 1  ;;  %s1014_s21 = sphi %s1061_s21, %s16_s21  }
   0x2   : > { %p212_p1 = scmp.lt.s32.totalorder %s1014_s21, 3 }
   0x4   : > { %p213_p2 = pnand %p943_p0, %p212_p1 }
   0x5   : > { %p242_p3 = scmp.lt.s32.totalorder (!%p213_p2), %s939_s22, 1  ;;  %s1016_s27 = smov (!%p213_p2), 1   ;;  %v1024_v2 = vmov (!%p213_p2), 0.0   ;;  %v486_v3 = vld [vmem:[%s1321_s2] sm:$0xf] (!%p213_p2)  ;;  %v1025_v4 = vmov (!%p213_p2), 0   ;;  %v260_v5 = vlaneseq (!%p213_p2) }
   0x6   : > { %216 = sbr.rel (%p213_p2) target bundleno = 775 (0x307), region = 44  ;;  %s1017_s28 = smov (!%p213_p2), 16   ;;  %567 = vmatprep.mubr.f32.mxu0 (!%p213_p2), %v1024_v2  ;;  %868 = vmatprep.mubr.f32.mxu1 (!%p213_p2), %v1024_v2  ;;  %v950_v10 = vld [vmem:[%s1324_s5 + $0x3] ss:$8 sm:$0x3] (!%p213_p2)  ;;  %vm496_vm8 = vcmask (!%p213_p2), 1043456  }
   0x7   : > { %s1018_s29 = smov (!%p213_p2), 17   ;;  %s1019_s30 = smov (!%p213_p2), 15   ;;  %1006 = vset.pattern.permute.xlu0 (!%p213_p2), %v1025_v4  ;;  %v268_v6 = vshrl.u32 (!%p213_p2), %v260_v5, 7  ;;  %v1120_v7 = vand.u32 (!%p213_p2), 127, %v260_v5  ;;  %vm492_vm9 = vcmask (!%p213_p2), 293888  }
   0x8   : > { %s1020_s7 = smov (!%p213_p2), 127   ;;  %s1021_s8 = smov (!%p213_p2), 112   ;;  %v265_v15 = vld [vmem:[%s1324_s5] ss:$8 sm:$0x3] (!%p213_p2) }
   0x9   : > { %s1022_s9 = smov (!%p213_p2), 113   ;;  %s1023_s10 = smov (!%p213_p2), 111   ;;  %v1122_v8 = vsub.s32 (!%p213_p2), 0, %v268_v6  ;;  %v1124_v9 = vsub.s32 (!%p213_p2), 1, %v268_v6  ;;  %vm339_vm0 = vcmp.lt.s32.totalorder (!%p213_p2), %v1120_v7, 1  ;;  %vm262_vm1 = vcmp.lt.s32.totalorder (!%p213_p2), %v1120_v7, 17 }
   0xa   : > { %v948_v16 = vld [vmem:[%s1324_s5 + $0x1] ss:$8 sm:$0x3] (!%p213_p2)  ;;  %vm285_vm2 = vcmp.lt.s32.totalorder (!%p213_p2), %v1120_v7, 16  ;;  %vm315_vm3 = vcmp.lt.s32.totalorder (!%p213_p2), %v1120_v7, 15  ;;  %vm371_vm4 = vcmp.lt.s32.totalorder (!%p213_p2), %v1120_v7, 127 }
   0xb   : > { %v348_v13 = vrot.slane (!%p213_p2), %v950_v10, %v1122_v8  ;;  %v352_v14 = vrot.slane (!%p213_p2), %v950_v10, %v1124_v9  ;;  %v270_v21 = vrot.slane (!%p213_p2), %v265_v15, %v1122_v8  ;;  %v274_v22 = vrot.slane (!%p213_p2), %v265_v15, %v1124_v9  ;;  %v949_v23 = vld [vmem:[%s1324_s5 + $0x2] ss:$8 sm:$0x3] (!%p213_p2)  ;;  %v951_v42 = vld [vmem:[%s1324_s5 + $0x5] ss:$8 sm:$0x3] (!%p213_p2) }
   0xc   : > { %v294_v26 = vrot.slane (!%p213_p2), %v948_v16, %v1122_v8  ;;  %v298_v27 = vrot.slane (!%p213_p2), %v948_v16, %v1124_v9  ;;  %v324_v32 = vrot.slane (!%p213_p2), %v949_v23, %v1122_v8  ;;  %v328_v33 = vrot.slane (!%p213_p2), %v949_v23, %v1124_v9  ;;  %v953_v53 = vld [vmem:[%s1324_s5 + $0x7] ss:$8 sm:$0x3] (!%p213_p2)  ;;  %v952_v62 = vld [vmem:[%s1324_s5 + $0x6] ss:$8 sm:$0x3] (!%p213_p2) }
   0xd   : > { %s1327_s22 = smov (!%p242_p3, %s939_s22), 1  ;;  %v380_v51 = vrot.slane %v951_v42, %v1122_v8  ;;  %v384_v52 = vrot.slane %v951_v42, %v1124_v9  ;;  %vm425_vm5 = vcmp.lt.s32.totalorder %v1120_v7, 112  ;;  %v434_v60 = vrot.slane %v953_v53, %v1122_v8  ;;  %v954_v15 = vld [vmem:[%s1324_s5 + $0x10] ss:$8 sm:$0x3] }
   0xe   : > { %s970_s23 = sshll.u32 %s1327_s22, 3  ;;  %v438_v61 = vrot.slane %v953_v53, %v1124_v9  ;;  %vm401_vm6 = vcmp.lt.s32.totalorder %v1120_v7, 113  ;;  %vm455_vm7 = vcmp.lt.s32.totalorder %v1120_v7, 111  ;;  %v789_v53 = vld [vmem:[%s1323_s4] sm:$0xf] }
   0xf   : > { %s246_s26 = scalar_lea.vmem %s1319_s0, %s970_s23  ;;  %v778_v7 = vld [vmem:[%s1322_s3] sm:$0xf]  ;;  %s251_s18 = scalar_lea.vmem %s1325_s6, %s970_s23 }
  0x10   : > { %v1077_v0 = vld [vmem:[%s246_s26] sm:$0xff] }
  0x11   : > { %335 = vrot.lane.b32.xlu1 %v1077_v0, %s1016_s27  ;;  %365 = vst [vmem:[#allocation2 + $0x20] sm:$0xf] %v1077_v0  ;;  %281 = vrot.lane.b32.xlu0 %v1077_v0, %s1017_s28  ;;  %v1086_v1 = vcombine.high %v1077_v0, %v1077_v0 }
  0x13   : > { %366 = vst [vmem:[#allocation2 + $0x28] sm:$0xf] %v1086_v1 }
  0x15   : > { %256 = vrot.lane.b32.xlu0 %v1077_v0, %s1018_s29  ;;  %337 = vrot.lane.b32.xlu1 %v1086_v1, %s1016_s27 }
  0x19   : > { %258 = vrot.lane.b32.xlu1 %v1086_v1, %s1018_s29  ;;  %283 = vrot.lane.b32.xlu0 %v1086_v1, %s1017_s28 }
  0x1d   : > { %313 = vrot.lane.b32.xlu1 %v1086_v1, %s1019_s30  ;;  %311 = vrot.lane.b32.xlu0 %v1077_v0, %s1019_s30 }
  0x21   : > { %369 = vrot.lane.b32.xlu1 %v1086_v1, %s1020_s7  ;;  %367 = vrot.lane.b32.xlu0 %v1077_v0, %s1020_s7 }
  0x25   : > { %423 = vrot.lane.b32.xlu1 %v1086_v1, %s1021_s8  ;;  %421 = vrot.lane.b32.xlu0 %v1077_v0, %s1021_s8 }
  0x29   : > { %399 = vrot.lane.b32.xlu1 %v1086_v1, %s1022_s9  ;;  %397 = vrot.lane.b32.xlu0 %v1077_v0, %s1022_s9 }
  0x2d   : > { %453 = vrot.lane.b32.xlu1 %v1086_v1, %s1023_s10  ;;  %451 = vrot.lane.b32.xlu0 %v1077_v0, %s1023_s10 }
  0x31   : > { %489 = vperm.xlu0 %1006, %v486_v3  }
  0x83   : > { %v336_v11 = vpop.permute.xlu1 %335  ;;  %v282_v12 = vpop.permute.xlu0 %281 }
  0x87   : > { %v257_v17 = vpop.permute.xlu0 %256  ;;  %v338_v18 = vpop.permute.xlu1 %337 }
  0x88   : > { %v340_v19 = vsel %vm339_vm0, %v336_v11, %v338_v18  ;;  %v341_v20 = vsel %vm339_vm0, %v338_v18, %v336_v11 }
  0x89   : > { %v355_v24 = vmul.f32 %v348_v13, %v341_v20  ;;  %v356_v25 = vmul.f32 %v352_v14, %v340_v19  ;;  %v414_v13 = vrot.slane %v952_v62, %v1124_v9 }
  0x8b   : > { %v359_v28 = vrot.slane %v355_v24, 4  ;;  %v360_v29 = vrot.slane %v356_v25, 4  ;;  %v259_v30 = vpop.permute.xlu1 %258  ;;  %v284_v31 = vpop.permute.xlu0 %283 }
  0x8c   : > { %v263_v34 = vsel %vm262_vm1, %v257_v17, %v259_v30  ;;  %v264_v35 = vsel %vm262_vm1, %v259_v30, %v257_v17  ;;  %v286_v36 = vsel %vm285_vm2, %v282_v12, %v284_v31  ;;  %v287_v37 = vsel %vm285_vm2, %v284_v31, %v282_v12 }
  0x8d   : > { %363 = vst [vmem:[#allocation2 + $0x10] sm:$0xf0] %v359_v28  ;;  %364 = vst [vmem:[#allocation2 + $0x18] sm:$0xf0] %v360_v29  ;;  %v277_v38 = vmul.f32 %v270_v21, %v264_v35  ;;  %v278_v39 = vmul.f32 %v274_v22, %v263_v34  ;;  %v301_v40 = vmul.f32 %v294_v26, %v287_v37 }
  0x8e   : > { %v302_v41 = vmul.f32 %v298_v27, %v286_v36  ;;  %v410_v12 = vrot.slane %v952_v62, %v1122_v8  ;;  %v464_v29 = vrot.slane %v954_v15, %v1122_v8  ;;  %v468_v30 = vrot.slane %v954_v15, %v1124_v9 }
  0x8f   : > { %279 = vst [vmem:[#allocation2] sm:$0xf] %v277_v38  ;;  %280 = vst [vmem:[#allocation2 + $0x8] sm:$0xf] %v278_v39  ;;  %v305_v43 = vrot.slane %v301_v40, 4  ;;  %v314_v45 = vpop.permute.xlu1 %313  ;;  %v312_v46 = vpop.permute.xlu0 %311 }
  0x90   : > { %v306_v44 = vrot.slane %v302_v41, 4  ;;  %v316_v47 = vsel %vm315_vm3, %v312_v46, %v314_v45  ;;  %v317_v48 = vsel %vm315_vm3, %v314_v45, %v312_v46  ;;  %v475_v45 = vld [vmem:[%s1320_s1] sm:$0xf] }
  0x91   : > { %309 = vst [vmem:[#allocation2] sm:$0xf0] %v305_v43  ;;  %v331_v49 = vmul.f32 %v324_v32, %v317_v48  ;;  %v332_v50 = vmul.f32 %v328_v33, %v316_v47 }
  0x92   : > { %310 = vst [vmem:[#allocation2 + $0x8] sm:$0xf0] %v306_v44 }
  0x93   : > { %333 = vst [vmem:[#allocation2 + $0x10] sm:$0xf] %v331_v49  ;;  %334 = vst [vmem:[#allocation2 + $0x18] sm:$0xf] %v332_v50  ;;  %v370_v54 = vpop.permute.xlu1 %369  ;;  %v368_v55 = vpop.permute.xlu0 %367 }
  0x94   : > { %v372_v56 = vsel %vm371_vm4, %v368_v55, %v370_v54  ;;  %v373_v57 = vsel %vm371_vm4, %v370_v54, %v368_v55  ;;  %v958_v54 = vld [vmem:[%s1324_s5 + $0x1] ss:$8 sm:$0x3] }
  0x95   : > { %v387_v58 = vmul.f32 %v380_v51, %v372_v56  ;;  %v388_v59 = vmul.f32 %v384_v52, %v373_v57  ;;  %v609_v57 = vrot.slane %v958_v54, %v1122_v8 }
  0x97   : > { %v391_v63 = vrot.slane %v387_v58, 4  ;;  %v392_v2 = vrot.slane %v388_v59, 4  ;;  %v424_v3 = vpop.permute.xlu1 %423  ;;  %v422_v4 = vpop.permute.xlu0 %421  ;;  %v613_v58 = vrot.slane %v958_v54, %v1124_v9  ;;  %v960_v59 = vld [vmem:[%s1324_s5 + $0x3] ss:$8 sm:$0x3] }
  0x98   : > { %v426_v5 = vsel %vm425_vm5, %v422_v4, %v424_v3  ;;  %v427_v6 = vsel %vm425_vm5, %v424_v3, %v422_v4  ;;  %v476_v17 = vld [vmem:[#allocation2] sm:$0xff]  ;;  %v659_v4 = vrot.slane %v960_v59, %v1122_v8 }
  0x99   : > { %395 = vst [vmem:[#allocation2 + $0x20] sm:$0xf0] %v391_v63  ;;  %396 = vst [vmem:[#allocation2 + $0x28] sm:$0xf0] %v392_v2  ;;  %v441_v10 = vmul.f32 %v434_v60, %v426_v5  ;;  %v442_v11 = vmul.f32 %v438_v61, %v427_v6  ;;  %v477_v14 = vld [vmem:[#allocation2 + $0x8] sm:$0xff]  ;;  %v663_v5 = vrot.slane %v960_v59, %v1124_v9 }
  0x9a   : > { %v479_v16 = vld [vmem:[#allocation2 + $0x18] sm:$0xff]  ;;  %v478_v18 = vld [vmem:[#allocation2 + $0x10] sm:$0xff]  ;;  %v582_v6 = vld [vmem:[%s1324_s5] ss:$8 sm:$0x3] }
  0x9b   : > { %v445_v19 = vrot.slane %v441_v10, 4  ;;  %v446_v20 = vrot.slane %v442_v11, 4  ;;  %v400_v21 = vpop.permute.xlu1 %399  ;;  %v398_v22 = vpop.permute.xlu0 %397  ;;  %v972_v23 = vpack.c.bf16 %v479_v16, %v477_v14  ;;  %v974_v24 = vpack.c.bf16 %v478_v18, %v476_v17 }
  0x9c   : > { %v402_v25 = vsel %vm401_vm6, %v398_v22, %v400_v21  ;;  %v403_v26 = vsel %vm401_vm6, %v400_v21, %v398_v22  ;;  %v587_v18 = vrot.slane %v582_v6, %v1122_v8 }
  0x9d   : > { %449 = vst [vmem:[#allocation2 + $0x30] sm:$0xf0] %v445_v19  ;;  %450 = vst [vmem:[#allocation2 + $0x38] sm:$0xf0] %v446_v20  ;;  %v417_v27 = vmul.f32 %v410_v12, %v402_v25  ;;  %v418_v28 = vmul.f32 %v414_v13, %v403_v26  ;;  %973 = vmatprep.subr.bf16.mxu0 %v972_v23  ;;  %v591_v19 = vrot.slane %v582_v6, %v1124_v9 }
  0x9e   : > { %975 = vmatpush1.bf16.msra.mxu0 %v974_v24  ;;  %v959_v20 = vld [vmem:[%s1324_s5 + $0x2] ss:$8 sm:$0x3] }
  0x9f   : > { %419 = vst [vmem:[#allocation2 + $0x30] sm:$0xf] %v417_v27  ;;  %420 = vst [vmem:[#allocation2 + $0x38] sm:$0xf] %v418_v28  ;;  %v454_v31 = vpop.permute.xlu1 %453  ;;  %v452_v32 = vpop.permute.xlu0 %451 }
  0xa0   : > { %v456_v33 = vsel %vm455_vm7, %v452_v32, %v454_v31  ;;  %v457_v34 = vsel %vm455_vm7, %v454_v31, %v452_v32  ;;  %v481_v37 = vld [vmem:[#allocation2 + $0x28] sm:$0xff]  ;;  %v480_v39 = vld [vmem:[#allocation2 + $0x20] sm:$0xff] }
  0xa1   : > { %v471_v35 = vmul.f32 %v464_v29, %v456_v33  ;;  %v472_v36 = vmul.f32 %v468_v30, %v457_v34  ;;  %v637_v29 = vrot.slane %v959_v20, %v1122_v8  ;;  %v641_v30 = vrot.slane %v959_v20, %v1124_v9  ;;  %v961_v31 = vld [vmem:[%s1324_s5 + $0x5] ss:$8 sm:$0x3] }
  0xa3   : > { %473 = vst [vmem:[#allocation2 + $0x40] sm:$0xf] %v471_v35  ;;  %474 = vst [vmem:[#allocation2 + $0x48] sm:$0xf] %v472_v36 }
  0xa6   : > { %v483_v38 = vld [vmem:[#allocation2 + $0x38] sm:$0xff]  ;;  %v482_v40 = vld [vmem:[#allocation2 + $0x30] sm:$0xff] }
  0xa7   : > { %v976_v41 = vpack.c.bf16 %v483_v38, %v481_v37  ;;  %v978_v42 = vpack.c.bf16 %v482_v40, %v480_v39  ;;  %v689_v37 = vrot.slane %v961_v31, %v1122_v8  ;;  %v693_v38 = vrot.slane %v961_v31, %v1124_v9  ;;  %v963_v39 = vld [vmem:[%s1324_s5 + $0x7] ss:$8 sm:$0x3] }
  0xa9   : > { %977 = vmatprep.subr.bf16.mxu0 %v976_v41 }
  0xaa   : > { %979 = vmatpush1.bf16.msra.mxu0 %v978_v42  ;;  %v485_v43 = vld [vmem:[#allocation2 + $0x48] sm:$0xf]  ;;  %v484_v44 = vld [vmem:[#allocation2 + $0x40] sm:$0xf] }
  0xab   : > { %955 = vmatprep.subr.msk.mxu0 %vm496_vm8, %v485_v43 }
  0xae   : > { %956 = vmatpush1.msk.msra.mxu0 %vm496_vm8, %v484_v44 }
  0xaf   : > { %957 = vmatmul.mubr.msk.f32.vlgmr.msra.gmra.mrb[0].mxu0 %vm492_vm9, %v475_v45 }
  0xb0   : > { %v490_v46 = vpop.permute.xlu0 %489 }
 0x182   : > { %v569_v47 = vpop.f32.mrb[0].mxu0 }
 0x183   : > { %v570_v48 = vadd.f32 %v569_v47, %v490_v46  ;;  %v571_v49 = vpop.f32.mrb[1].mxu0  ;;  %v743_v47 = vrot.slane %v963_v39, %v1124_v9 }
 0x184   : > { %v572_v50 = vadd.f32 %v571_v49, %v490_v46  ;;  %v739_v46 = vrot.slane %v963_v39, %v1122_v8 }
 0x185   : > { %v574_v51 = vmax.f32 %v570_v48, 0.0  ;;  %v962_v48 = vld [vmem:[%s1324_s5 + $0x6] ss:$8 sm:$0x3] }
 0x186   : > { %v575_v52 = vmax.f32 %v572_v50, 0.0 }
 0x187   : > { %676 = vst [vmem:[#allocation2 + $0x20] sm:$0xf] %v574_v51  ;;  %648 = vrot.lane.b32.xlu0 %v574_v51, %s1016_s27  ;;  %598 = vrot.lane.b32.xlu1 %v574_v51, %s1017_s28 }
 0x188   : > { %677 = vst [vmem:[#allocation2 + $0x28] sm:$0xf] %v575_v52 }
 0x18b   : > { %576 = vrot.lane.b32.xlu0 %v574_v51, %s1018_s29  ;;  %600 = vrot.lane.b32.xlu1 %v575_v52, %s1017_s28 }
 0x18f   : > { %626 = vrot.lane.b32.xlu0 %v574_v51, %s1019_s30  ;;  %650 = vrot.lane.b32.xlu1 %v575_v52, %s1016_s27 }
 0x193   : > { %678 = vrot.lane.b32.xlu0 %v574_v51, %s1020_s7  ;;  %578 = vrot.lane.b32.xlu1 %v575_v52, %s1018_s29 }
 0x197   : > { %728 = vrot.lane.b32.xlu0 %v574_v51, %s1021_s8  ;;  %628 = vrot.lane.b32.xlu1 %v575_v52, %s1019_s30 }
 0x19b   : > { %706 = vrot.lane.b32.xlu0 %v574_v51, %s1022_s9  ;;  %680 = vrot.lane.b32.xlu1 %v575_v52, %s1020_s7 }
 0x19f   : > { %756 = vrot.lane.b32.xlu0 %v574_v51, %s1023_s10  ;;  %730 = vrot.lane.b32.xlu1 %v575_v52, %s1021_s8 }
 0x1a3   : > { %792 = vperm.xlu0 %1006, %v789_v53   ;;  %708 = vrot.lane.b32.xlu1 %v575_v52, %s1022_s9 }
 0x1a7   : > { %758 = vrot.lane.b32.xlu1 %v575_v52, %s1023_s10 }
 0x1f9   : > { %v649_v55 = vpop.permute.xlu0 %648  ;;  %v599_v56 = vpop.permute.xlu1 %598 }
 0x1fd   : > { %v577_v60 = vpop.permute.xlu0 %576  ;;  %v601_v61 = vpop.permute.xlu1 %600 }
 0x1fe   : > { %v602_v62 = vsel %vm285_vm2, %v599_v56, %v601_v61  ;;  %v603_v63 = vsel %vm285_vm2, %v601_v61, %v599_v56 }
 0x1ff   : > { %v616_v2 = vmul.f32 %v609_v57, %v603_v63  ;;  %v617_v3 = vmul.f32 %v613_v58, %v602_v62  ;;  %v717_v57 = vrot.slane %v962_v48, %v1122_v8  ;;  %v721_v58 = vrot.slane %v962_v48, %v1124_v9 }
 0x201   : > { %v620_v10 = vrot.slane %v616_v2, 4  ;;  %v621_v11 = vrot.slane %v617_v3, 4  ;;  %v627_v12 = vpop.permute.xlu0 %626  ;;  %v651_v13 = vpop.permute.xlu1 %650 }
 0x202   : > { %v652_v14 = vsel %vm339_vm0, %v649_v55, %v651_v13  ;;  %v653_v15 = vsel %vm339_vm0, %v651_v13, %v649_v55 }
 0x203   : > { %624 = vst [vmem:[#allocation2] sm:$0xf0] %v620_v10  ;;  %625 = vst [vmem:[#allocation2 + $0x8] sm:$0xf0] %v621_v11  ;;  %v666_v16 = vmul.f32 %v659_v4, %v653_v15  ;;  %v667_v17 = vmul.f32 %v663_v5, %v652_v14 }
 0x205   : > { %v670_v21 = vrot.slane %v666_v16, 4  ;;  %v671_v22 = vrot.slane %v667_v17, 4  ;;  %v579_v23 = vpop.permute.xlu1 %578  ;;  %v679_v26 = vpop.permute.xlu0 %678 }
 0x206   : > { %v580_v24 = vsel %vm262_vm1, %v577_v60, %v579_v23  ;;  %v581_v25 = vsel %vm262_vm1, %v579_v23, %v577_v60  ;;  %v964_v60 = vld [vmem:[%s1324_s5 + $0x10] ss:$8 sm:$0x3] }
 0x207   : > { %674 = vst [vmem:[#allocation2 + $0x10] sm:$0xf0] %v670_v21  ;;  %675 = vst [vmem:[#allocation2 + $0x18] sm:$0xf0] %v671_v22  ;;  %v594_v27 = vmul.f32 %v587_v18, %v581_v25  ;;  %v595_v28 = vmul.f32 %v591_v19, %v580_v24  ;;  %v767_v14 = vrot.slane %v964_v60, %v1122_v8 }
 0x208   : > { %v771_v15 = vrot.slane %v964_v60, %v1124_v9 }
 0x209   : > { %596 = vst [vmem:[#allocation2] sm:$0xf] %v594_v27  ;;  %597 = vst [vmem:[#allocation2 + $0x8] sm:$0xf] %v595_v28  ;;  %v629_v32 = vpop.permute.xlu1 %628  ;;  %v729_v40 = vpop.permute.xlu0 %728 }
 0x20a   : > { %v630_v33 = vsel %vm315_vm3, %v627_v12, %v629_v32  ;;  %v631_v34 = vsel %vm315_vm3, %v629_v32, %v627_v12 }
 0x20b   : > { %v644_v35 = vmul.f32 %v637_v29, %v631_v34  ;;  %v645_v36 = vmul.f32 %v641_v30, %v630_v33 }
 0x20d   : > { %646 = vst [vmem:[#allocation2 + $0x10] sm:$0xf] %v644_v35  ;;  %647 = vst [vmem:[#allocation2 + $0x18] sm:$0xf] %v645_v36  ;;  %v681_v41 = vpop.permute.xlu1 %680  ;;  %v707_v54 = vpop.permute.xlu0 %706 }
 0x20e   : > { %v682_v42 = vsel %vm371_vm4, %v679_v26, %v681_v41  ;;  %v683_v43 = vsel %vm371_vm4, %v681_v41, %v679_v26 }
 0x20f   : > { %v696_v44 = vmul.f32 %v689_v37, %v682_v42  ;;  %v697_v45 = vmul.f32 %v693_v38, %v683_v43 }
 0x210   : > { %v780_v59 = vld [vmem:[#allocation2 + $0x8] sm:$0xff]  ;;  %v779_v62 = vld [vmem:[#allocation2] sm:$0xff] }
 0x211   : > { %v700_v49 = vrot.slane %v696_v44, 4  ;;  %v701_v50 = vrot.slane %v697_v45, 4  ;;  %v731_v51 = vpop.permute.xlu1 %730  ;;  %v757_v16 = vpop.permute.xlu0 %756 }
 0x212   : > { %v732_v52 = vsel %vm425_vm5, %v729_v40, %v731_v51  ;;  %v733_v53 = vsel %vm425_vm5, %v731_v51, %v729_v40 }
 0x213   : > { %704 = vst [vmem:[#allocation2 + $0x20] sm:$0xf0] %v700_v49  ;;  %705 = vst [vmem:[#allocation2 + $0x28] sm:$0xf0] %v701_v50  ;;  %v746_v55 = vmul.f32 %v739_v46, %v732_v52  ;;  %v747_v56 = vmul.f32 %v743_v47, %v733_v53 }
 0x214   : > { %v782_v61 = vld [vmem:[#allocation2 + $0x18] sm:$0xff]  ;;  %v781_v63 = vld [vmem:[#allocation2 + $0x10] sm:$0xff] }
 0x215   : > { %v750_v2 = vrot.slane %v746_v55, 4  ;;  %v751_v3 = vrot.slane %v747_v56, 4  ;;  %v709_v4 = vpop.permute.xlu1 %708  ;;  %v980_v5 = vpack.c.bf16 %v782_v61, %v780_v59  ;;  %v982_v6 = vpack.c.bf16 %v781_v63, %v779_v62 }
 0x216   : > { %v710_v10 = vsel %vm401_vm6, %v707_v54, %v709_v4  ;;  %v711_v11 = vsel %vm401_vm6, %v709_v4, %v707_v54 }
 0x217   : > { %754 = vst [vmem:[#allocation2 + $0x30] sm:$0xf0] %v750_v2  ;;  %755 = vst [vmem:[#allocation2 + $0x38] sm:$0xf0] %v751_v3  ;;  %v724_v12 = vmul.f32 %v717_v57, %v710_v10  ;;  %v725_v13 = vmul.f32 %v721_v58, %v711_v11  ;;  %981 = vmatprep.subr.bf16.mxu1 %v980_v5 }
 0x218   : > { %983 = vmatpush1.bf16.msra.mxu1 %v982_v6 }
 0x219   : > { %726 = vst [vmem:[#allocation2 + $0x30] sm:$0xf] %v724_v12  ;;  %727 = vst [vmem:[#allocation2 + $0x38] sm:$0xf] %v725_v13  ;;  %v759_v17 = vpop.permute.xlu1 %758 }
 0x21a   : > { %v760_v18 = vsel %vm455_vm7, %v757_v16, %v759_v17  ;;  %v761_v19 = vsel %vm455_vm7, %v759_v17, %v757_v16  ;;  %v784_v22 = vld [vmem:[#allocation2 + $0x28] sm:$0xff]  ;;  %v783_v8 = vld [vmem:[#allocation2 + $0x20] sm:$0xff] }
 0x21b   : > { %v774_v20 = vmul.f32 %v767_v14, %v760_v18  ;;  %v775_v21 = vmul.f32 %v771_v15, %v761_v19 }
 0x21d   : > { %776 = vst [vmem:[#allocation2 + $0x40] sm:$0xf] %v774_v20  ;;  %777 = vst [vmem:[#allocation2 + $0x48] sm:$0xf] %v775_v21 }
 0x220   : > { %v786_v23 = vld [vmem:[#allocation2 + $0x38] sm:$0xff]  ;;  %v785_v24 = vld [vmem:[#allocation2 + $0x30] sm:$0xff] }
 0x221   : > { %v984_v9 = vpack.c.bf16 %v786_v23, %v784_v22  ;;  %v986_v25 = vpack.c.bf16 %v785_v24, %v783_v8 }
 0x222   : > { %v793_v28 = vpop.permute.xlu0 %792 }
 0x223   : > { %985 = vmatprep.subr.bf16.mxu1 %v984_v9 }
 0x224   : > { %987 = vmatpush1.bf16.msra.mxu1 %v986_v25  ;;  %v788_v26 = vld [vmem:[#allocation2 + $0x48] sm:$0xf]  ;;  %v787_v27 = vld [vmem:[#allocation2 + $0x40] sm:$0xf] }
 0x225   : > { %965 = vmatprep.subr.msk.mxu1 %vm496_vm8, %v788_v26 }
 0x228   : > { %966 = vmatpush1.msk.msra.mxu1 %vm496_vm8, %v787_v27 }
 0x229   : > { %967 = vmatmul.mubr.msk.f32.vlgmr.msra.gmra.mrb[0].mxu1 %vm492_vm9, %v778_v7 }
 0x2fc   : > { %v870_v29 = vpop.f32.mrb[0].mxu1 }
 0x2fd   : > { %v871_v30 = vadd.f32 %v870_v29, %v793_v28  ;;  %v872_v31 = vpop.f32.mrb[1].mxu1 }
 0x2fe   : > { %v873_v32 = vadd.f32 %v872_v31, %v793_v28 }
 0x2ff   : > { %v875_v33 = vadd.f32 %v871_v30, %v1077_v0 }
 0x300   : > { %v876_v34 = vadd.f32 %v873_v32, %v1086_v1 }
 0x301   : > { %v877_v35 = vmax.f32 %v875_v33, 0.0 }
 0x302   : > { %v878_v36 = vmax.f32 %v876_v34, 0.0 }
 0x304   : > { %v881_v37 = vcombine.low %v877_v35, %v878_v36 }
 0x306   : > { %883 = vst [vmem:[%s251_s18] sm:$0xff] %v881_v37 }
 0x307 PF: > { %s16_s21 = sadd.s32 1, %s1014_s21  }
 0x308   : > { %p13_p4 = scmp.ge.s32.totalorder %s16_s21, 4  }
 0x30a   :  { %15 = sbr.rel (!%p13_p4) target bundleno = 1 (0x1), region = 81 }

</bundles_post_ra>
